<compile_context>
chip_gen: v7x
topology: tpu7x:2x2x1
jax: 0.10.0
libtpu: 0.0.40
codegen_flags: <defaults>
</compile_context>

<pallas_src>
import functools
import math

import jax
import jax.numpy as jnp
from jax.experimental import pallas as pl
from jax.experimental.pallas import tpu as pltpu


def _mha_kernel(x_ref, wqkv_ref, wproj_ref, bproj_ref, o_ref, *, T, H, hs,
                approx_recip):
    # x_ref:     (T, C)       one batch's activations (grid axis 0 == batch)
    # wqkv_ref:  (C, 3*H*hs)  fused Q|K|V weights, 1/sqrt(C) pre-folded into Q
    # wproj_ref: (H*hs, C)    fused output-projection weight (f32, tiny)
    # bproj_ref: (1, C)       output-projection bias (f32)
    # o_ref:     (T, C)
    F = H * hs
    C = o_ref.shape[-1]
    cdt = x_ref.dtype  # MXU operand dtype (f32 default; bf16 on the perf path)

    x = x_ref[...]                                                       # (T, C)
    # One fused, lane-dense QKV projection; f32 accumulation on the MXU.
    qkv = jnp.dot(x, wqkv_ref[...], preferred_element_type=jnp.float32)  # (T, 3F)
    # Single full-tile cast for the MXU operands (no-op when cdt == f32).
    qkv_c = qkv.astype(cdt)

    # Causal mask built once, reused for every head.
    row = jax.lax.broadcasted_iota(jnp.int32, (T, T), 0)
    col = jax.lax.broadcasted_iota(jnp.int32, (T, T), 1)
    causal = col <= row
    neg = jnp.finfo(jnp.float32).min  # finite "-inf"; diagonal is always unmasked

    # Per-head attention + projection accumulate.  H is a tiny static int, so
    # this Python loop is unrolled 2-D matmuls (fori_loop / grid axis at scale).
    acc = jnp.zeros((T, C), jnp.float32)
    for h in range(H):
        # NOTE: the PyTorch Head scales by 1/sqrt(n_embd) (= C), NOT the usual
        # 1/sqrt(head_size); the scale is pre-folded into the Q weight columns.
        q = qkv_c[:, h * hs:(h + 1) * hs]                       # (T, hs)
        k = qkv_c[:, F + h * hs:F + (h + 1) * hs]               # (T, hs)
        v = qkv_c[:, 2 * F + h * hs:2 * F + (h + 1) * hs]       # (T, hs)

        s = jnp.dot(q, k.T, preferred_element_type=jnp.float32)  # (T, T) f32
        s = jnp.where(causal, s, neg)

        # Numerically-stable softmax; all elementwise math stays f32 (v5e-safe).
        m = jnp.max(s, axis=-1, keepdims=True)
        e = jnp.exp(s - m)
        denom = jnp.sum(e, axis=-1, keepdims=True)
        if approx_recip:
            p = e * pl.reciprocal(denom, approx=True)   # EUP slot, relaxed path
        else:
            p = e / denom                               # exact softmax (f32 path)

        pv = jnp.dot(p.astype(cdt), v,
                     preferred_element_type=jnp.float32)          # (T, hs) f32
        # Head-concat + Linear == sum over heads of (T,hs) @ (hs,C).
        # wproj stays f32 so the 8-row slices are sublane-tile aligned.
        acc = acc + jnp.dot(pv, wproj_ref[h * hs:(h + 1) * hs, :],
                            preferred_element_type=jnp.float32)   # (T, C)

    out = acc + bproj_ref[...]
    o_ref[...] = out.astype(o_ref.dtype)


def fuse_mha_weights(wq, wk, wv, w_proj, b_proj, *, compute_dtype=jnp.float32):
    """One-time weight fusion (call at init, reuse every forward).

    wq/wk/wv: (H, C, hs); w_proj: (H, hs, C) (= proj.weight.T per head);
    b_proj: (C,).  Returns (w_qkv (C,3F), w_p (F,C) f32, b2 (1,C) f32).
    The 1/sqrt(n_embd) attention scale is folded into the Q columns.
    """
    H, C, hs = wq.shape
    F = H * hs
    scale = 1.0 / math.sqrt(C)  # intentionally 1/sqrt(n_embd), per the module

    def stack_heads(w):  # (H, C, hs) -> (C, H*hs), heads stacked along lanes
        return jnp.transpose(w, (1, 0, 2)).reshape(C, F)

    w_qkv = jnp.concatenate(
        [stack_heads(wq) * scale, stack_heads(wk), stack_heads(wv)],
        axis=-1).astype(compute_dtype)                       # (C, 3F)
    w_p = w_proj.reshape(F, C).astype(jnp.float32)           # (F, C), keep f32
    b2 = b_proj.reshape(1, C).astype(jnp.float32)            # (1, C)
    return w_qkv, w_p, b2


@functools.partial(jax.jit, static_argnames=("H", "hs", "approx_recip"))
def multi_head_attention(x, w_qkv, w_p, b2, *, H, hs, approx_recip=False):
    """x: (B, T, C); fused weights from fuse_mha_weights(). Dropout = identity."""
    B, T, C = x.shape
    F = H * hs
    compute_dtype = w_qkv.dtype

    x2 = x.reshape(B * T, C)
    if x2.dtype != compute_dtype:
        x2 = x2.astype(compute_dtype)

    kernel = functools.partial(_mha_kernel, T=T, H=H, hs=hs,
                               approx_recip=approx_recip)

    out = pl.pallas_call(
        kernel,
        out_shape=jax.ShapeDtypeStruct((B * T, C), x.dtype),
        grid_spec=pltpu.PrefetchScalarGridSpec(
            num_scalar_prefetch=0,
            grid=(B,),  # one batch per step; "parallel" lets v7x use both TCs
            in_specs=[
                pl.BlockSpec((T, C), lambda b: (b, 0)),       # x rows for batch b
                pl.BlockSpec((C, 3 * F), lambda b: (0, 0)),   # fused QKV weight
                pl.BlockSpec((F, C), lambda b: (0, 0)),       # fused proj weight
                pl.BlockSpec((1, C), lambda b: (0, 0)),       # proj bias
            ],
            out_specs=pl.BlockSpec((T, C), lambda b: (b, 0)),
        ),
        compiler_params=pltpu.CompilerParams(
            dimension_semantics=("parallel",)),
    )(x2, w_qkv, w_p, b2)
    return out.reshape(B, T, C)


def reference(x, wq, wk, wv, w_proj, b_proj):
    """Pure-JAX f32 reference mirroring the PyTorch module (eval mode)."""
    B, T, C = x.shape
    H = wq.shape[0]
    mask = jnp.tril(jnp.ones((T, T), bool))
    outs = []
    for h in range(H):
        q = x @ wq[h]
        k = x @ wk[h]
        v = x @ wv[h]
        s = jnp.einsum("btd,bsd->bts", q, k)
        s = jnp.where(mask[None], s, -jnp.inf) / math.sqrt(C)
        p = jax.nn.softmax(s, axis=-1)
        outs.append(jnp.einsum("bts,bsd->btd", p, v))
    cat = jnp.concatenate(outs, axis=-1)
    wp_flat = w_proj.reshape(H * w_proj.shape[1], C)
    return cat @ wp_flat + b_proj


if __name__ == "__main__":
    # Shapes consistent with the module: n_embd=32, num_heads=4, head_size=8,
    # block_size (=T) = 8, batch=2.
    B, T, C = 2, 8, 32
    H, hs = 4, 8

    key = jax.random.PRNGKey(0)
    kx, kq, kk, kv, kp, kb = jax.random.split(key, 6)

    x = jax.random.normal(kx, (B, T, C), jnp.float32)
    # nn.Linear-style init scale ~ 1/sqrt(fan_in)
    wq = jax.random.normal(kq, (H, C, hs), jnp.float32) / math.sqrt(C)
    wk = jax.random.normal(kk, (H, C, hs), jnp.float32) / math.sqrt(C)
    wv = jax.random.normal(kv, (H, C, hs), jnp.float32) / math.sqrt(C)
    w_proj = jax.random.normal(kp, (H, hs, C), jnp.float32) / math.sqrt(H * hs)
    b_proj = jax.random.normal(kb, (C,), jnp.float32) * 0.01

    ref = reference(x, wq, wk, wv, w_proj, b_proj)

    # f32 compute path (default at these latency-bound sizes): fuse weights
    # ONCE, then the per-call wrapper is just reshape + pallas_call.
    w_qkv_f32, w_p, b2 = fuse_mha_weights(wq, wk, wv, w_proj, b_proj,
                                          compute_dtype=jnp.float32)
    out_f32 = multi_head_attention(x, w_qkv_f32, w_p, b2, H=H, hs=hs,
                                   approx_recip=False)
    out_f32 = jax.block_until_ready(out_f32)
    assert out_f32.shape == (B, T, C)
    assert jnp.allclose(out_f32, ref, atol=2e-4, rtol=2e-4), \
        "f32 path mismatch vs reference"

    # bf16 MXU-operand path (for larger problems): relaxed tolerance vs f32 ref.
    w_qkv_bf16, _, _ = fuse_mha_weights(wq, wk, wv, w_proj, b_proj,
                                        compute_dtype=jnp.bfloat16)
    out_bf16 = multi_head_attention(x, w_qkv_bf16, w_p, b2, H=H, hs=hs,
                                    approx_recip=True)
    out_bf16 = jax.block_until_ready(out_bf16)
    assert jnp.allclose(out_bf16, ref, atol=5e-2, rtol=5e-2), \
        "bf16 path mismatch vs reference"

    print("KERNEL_OK")
</pallas_src>

<mosaic_0001>
module attributes {stable_mosaic.version = 11 : i64} {
  func.func @_mha_kernel(%arg0: i32, %arg1: memref<8x32xf32, #tpu.memory_space<vmem>>, %arg2: memref<32x96xf32, #tpu.memory_space<vmem>>, %arg3: memref<32x32xf32, #tpu.memory_space<vmem>>, %arg4: memref<1x32xf32, #tpu.memory_space<vmem>>, %arg5: memref<8x32xf32, #tpu.memory_space<vmem>>) attributes {dimension_semantics = [#tpu.dimension_semantics<parallel>], iteration_bounds = array<i64: 2>, scalar_prefetch = 0 : i64, scratch_operands = 0 : i64, tpu.core_type = #tpu.core_type<tc>, window_params = [{transform_indices = @transform_0, window_bounds = array<i64: 8, 32>}, {pipeline_mode = #tpu.pipeline_mode<synchronous>, transform_indices = @transform_1, window_bounds = array<i64: 32, 96>}, {pipeline_mode = #tpu.pipeline_mode<synchronous>, transform_indices = @transform_2, window_bounds = array<i64: 32, 32>}, {pipeline_mode = #tpu.pipeline_mode<synchronous>, transform_indices = @transform_3, window_bounds = array<i64: 1, 32>}, {transform_indices = @transform_4, window_bounds = array<i64: 8, 32>}]} {
    %c0 = arith.constant 0 : index
    %c0_0 = arith.constant 0 : index
    %0 = vector.load %arg1[%c0, %c0_0] : memref<8x32xf32, #tpu.memory_space<vmem>>, vector<8x32xf32>
    %c0_1 = arith.constant 0 : index
    %c0_2 = arith.constant 0 : index
    %1 = vector.load %arg2[%c0_1, %c0_2] : memref<32x96xf32, #tpu.memory_space<vmem>>, vector<32x96xf32>
    %cst = arith.constant dense<0.000000e+00> : vector<8x96xf32>
    %2 = tpu.matmul %0, %1, %cst {dimension_numbers = #tpu.dot_dimension_numbers<[1], [0], [0], [1], [0, 0, 1, 1], [], []>} : vector<8x32xf32>, vector<32x96xf32>, vector<8x96xf32> -> vector<8x96xf32>
    %3 = tpu.iota {dimensions = array<i32: 0>} : vector<8x8xi32>
    %4 = tpu.iota {dimensions = array<i32: 1>} : vector<8x8xi32>
    %5 = arith.cmpi sle, %4, %3 : vector<8x8xi32>
    %cst_3 = arith.constant 0.000000e+00 : f32
    %6 = vector.broadcast %cst_3 : f32 to vector<8x32xf32>
    %7 = vector.extract_strided_slice %2 {offsets = [0, 0], sizes = [8, 8], strides = [1, 1]} : vector<8x96xf32> to vector<8x8xf32>
    %8 = vector.extract_strided_slice %2 {offsets = [0, 32], sizes = [8, 8], strides = [1, 1]} : vector<8x96xf32> to vector<8x8xf32>
    %9 = vector.extract_strided_slice %2 {offsets = [0, 64], sizes = [8, 8], strides = [1, 1]} : vector<8x96xf32> to vector<8x8xf32>
    %10 = tpu.transpose %8, [1, 0] : vector<8x8xf32> -> vector<8x8xf32>
    %cst_4 = arith.constant dense<0.000000e+00> : vector<8x8xf32>
    %11 = tpu.matmul %7, %10, %cst_4 {dimension_numbers = #tpu.dot_dimension_numbers<[1], [0], [0], [1], [0, 0, 1, 1], [], []>} : vector<8x8xf32>, vector<8x8xf32>, vector<8x8xf32> -> vector<8x8xf32>
    %cst_5 = arith.constant -3.40282347E+38 : f32
    %12 = vector.broadcast %cst_5 : f32 to vector<8x8xf32>
    %13 = arith.select %5, %11, %12 : vector<8x8xi1>, vector<8x8xf32>
    %cst_6 = arith.constant dense<0xFF800000> : vector<8xf32>
    %14 = vector.multi_reduction <maximumf>, %13, %cst_6 [1] : vector<8x8xf32> to vector<8xf32>
    %15 = vector.shape_cast %14 : vector<8xf32> to vector<8x1xf32>
    %16 = vector.broadcast %15 : vector<8x1xf32> to vector<8x8xf32>
    %17 = arith.subf %13, %16 : vector<8x8xf32>
    %18 = math.exp %17 : vector<8x8xf32>
    %cst_7 = arith.constant dense<0.000000e+00> : vector<8xf32>
    %19 = vector.multi_reduction <add>, %18, %cst_7 [1] : vector<8x8xf32> to vector<8xf32>
    %20 = vector.shape_cast %19 : vector<8xf32> to vector<8x1xf32>
    %21 = vector.broadcast %20 : vector<8x1xf32> to vector<8x8xf32>
    %22 = arith.divf %18, %21 : vector<8x8xf32>
    %cst_8 = arith.constant dense<0.000000e+00> : vector<8x8xf32>
    %23 = tpu.matmul %22, %9, %cst_8 {dimension_numbers = #tpu.dot_dimension_numbers<[1], [0], [0], [1], [0, 0, 1, 1], [], []>} : vector<8x8xf32>, vector<8x8xf32>, vector<8x8xf32> -> vector<8x8xf32>
    %c0_9 = arith.constant 0 : index
    %c0_10 = arith.constant 0 : index
    %24 = vector.load %arg3[%c0_9, %c0_10] : memref<32x32xf32, #tpu.memory_space<vmem>>, vector<8x32xf32>
    %cst_11 = arith.constant dense<0.000000e+00> : vector<8x32xf32>
    %25 = tpu.matmul %23, %24, %cst_11 {dimension_numbers = #tpu.dot_dimension_numbers<[1], [0], [0], [1], [0, 0, 1, 1], [], []>} : vector<8x8xf32>, vector<8x32xf32>, vector<8x32xf32> -> vector<8x32xf32>
    %26 = arith.addf %6, %25 : vector<8x32xf32>
    %27 = vector.extract_strided_slice %2 {offsets = [0, 8], sizes = [8, 8], strides = [1, 1]} : vector<8x96xf32> to vector<8x8xf32>
    %28 = vector.extract_strided_slice %2 {offsets = [0, 40], sizes = [8, 8], strides = [1, 1]} : vector<8x96xf32> to vector<8x8xf32>
    %29 = vector.extract_strided_slice %2 {offsets = [0, 72], sizes = [8, 8], strides = [1, 1]} : vector<8x96xf32> to vector<8x8xf32>
    %30 = tpu.transpose %28, [1, 0] : vector<8x8xf32> -> vector<8x8xf32>
    %cst_12 = arith.constant dense<0.000000e+00> : vector<8x8xf32>
    %31 = tpu.matmul %27, %30, %cst_12 {dimension_numbers = #tpu.dot_dimension_numbers<[1], [0], [0], [1], [0, 0, 1, 1], [], []>} : vector<8x8xf32>, vector<8x8xf32>, vector<8x8xf32> -> vector<8x8xf32>
    %cst_13 = arith.constant -3.40282347E+38 : f32
    %32 = vector.broadcast %cst_13 : f32 to vector<8x8xf32>
    %33 = arith.select %5, %31, %32 : vector<8x8xi1>, vector<8x8xf32>
    %cst_14 = arith.constant dense<0xFF800000> : vector<8xf32>
    %34 = vector.multi_reduction <maximumf>, %33, %cst_14 [1] : vector<8x8xf32> to vector<8xf32>
    %35 = vector.shape_cast %34 : vector<8xf32> to vector<8x1xf32>
    %36 = vector.broadcast %35 : vector<8x1xf32> to vector<8x8xf32>
    %37 = arith.subf %33, %36 : vector<8x8xf32>
    %38 = math.exp %37 : vector<8x8xf32>
    %cst_15 = arith.constant dense<0.000000e+00> : vector<8xf32>
    %39 = vector.multi_reduction <add>, %38, %cst_15 [1] : vector<8x8xf32> to vector<8xf32>
    %40 = vector.shape_cast %39 : vector<8xf32> to vector<8x1xf32>
    %41 = vector.broadcast %40 : vector<8x1xf32> to vector<8x8xf32>
    %42 = arith.divf %38, %41 : vector<8x8xf32>
    %cst_16 = arith.constant dense<0.000000e+00> : vector<8x8xf32>
    %43 = tpu.matmul %42, %29, %cst_16 {dimension_numbers = #tpu.dot_dimension_numbers<[1], [0], [0], [1], [0, 0, 1, 1], [], []>} : vector<8x8xf32>, vector<8x8xf32>, vector<8x8xf32> -> vector<8x8xf32>
    %c8 = arith.constant 8 : index
    %c0_17 = arith.constant 0 : index
    %44 = vector.load %arg3[%c8, %c0_17] : memref<32x32xf32, #tpu.memory_space<vmem>>, vector<8x32xf32>
    %cst_18 = arith.constant dense<0.000000e+00> : vector<8x32xf32>
    %45 = tpu.matmul %43, %44, %cst_18 {dimension_numbers = #tpu.dot_dimension_numbers<[1], [0], [0], [1], [0, 0, 1, 1], [], []>} : vector<8x8xf32>, vector<8x32xf32>, vector<8x32xf32> -> vector<8x32xf32>
    %46 = arith.addf %26, %45 : vector<8x32xf32>
    %47 = vector.extract_strided_slice %2 {offsets = [0, 16], sizes = [8, 8], strides = [1, 1]} : vector<8x96xf32> to vector<8x8xf32>
    %48 = vector.extract_strided_slice %2 {offsets = [0, 48], sizes = [8, 8], strides = [1, 1]} : vector<8x96xf32> to vector<8x8xf32>
    %49 = vector.extract_strided_slice %2 {offsets = [0, 80], sizes = [8, 8], strides = [1, 1]} : vector<8x96xf32> to vector<8x8xf32>
    %50 = tpu.transpose %48, [1, 0] : vector<8x8xf32> -> vector<8x8xf32>
    %cst_19 = arith.constant dense<0.000000e+00> : vector<8x8xf32>
    %51 = tpu.matmul %47, %50, %cst_19 {dimension_numbers = #tpu.dot_dimension_numbers<[1], [0], [0], [1], [0, 0, 1, 1], [], []>} : vector<8x8xf32>, vector<8x8xf32>, vector<8x8xf32> -> vector<8x8xf32>
    %cst_20 = arith.constant -3.40282347E+38 : f32
    %52 = vector.broadcast %cst_20 : f32 to vector<8x8xf32>
    %53 = arith.select %5, %51, %52 : vector<8x8xi1>, vector<8x8xf32>
    %cst_21 = arith.constant dense<0xFF800000> : vector<8xf32>
    %54 = vector.multi_reduction <maximumf>, %53, %cst_21 [1] : vector<8x8xf32> to vector<8xf32>
    %55 = vector.shape_cast %54 : vector<8xf32> to vector<8x1xf32>
    %56 = vector.broadcast %55 : vector<8x1xf32> to vector<8x8xf32>
    %57 = arith.subf %53, %56 : vector<8x8xf32>
    %58 = math.exp %57 : vector<8x8xf32>
    %cst_22 = arith.constant dense<0.000000e+00> : vector<8xf32>
    %59 = vector.multi_reduction <add>, %58, %cst_22 [1] : vector<8x8xf32> to vector<8xf32>
    %60 = vector.shape_cast %59 : vector<8xf32> to vector<8x1xf32>
    %61 = vector.broadcast %60 : vector<8x1xf32> to vector<8x8xf32>
    %62 = arith.divf %58, %61 : vector<8x8xf32>
    %cst_23 = arith.constant dense<0.000000e+00> : vector<8x8xf32>
    %63 = tpu.matmul %62, %49, %cst_23 {dimension_numbers = #tpu.dot_dimension_numbers<[1], [0], [0], [1], [0, 0, 1, 1], [], []>} : vector<8x8xf32>, vector<8x8xf32>, vector<8x8xf32> -> vector<8x8xf32>
    %c16 = arith.constant 16 : index
    %c0_24 = arith.constant 0 : index
    %64 = vector.load %arg3[%c16, %c0_24] : memref<32x32xf32, #tpu.memory_space<vmem>>, vector<8x32xf32>
    %cst_25 = arith.constant dense<0.000000e+00> : vector<8x32xf32>
    %65 = tpu.matmul %63, %64, %cst_25 {dimension_numbers = #tpu.dot_dimension_numbers<[1], [0], [0], [1], [0, 0, 1, 1], [], []>} : vector<8x8xf32>, vector<8x32xf32>, vector<8x32xf32> -> vector<8x32xf32>
    %66 = arith.addf %46, %65 : vector<8x32xf32>
    %67 = vector.extract_strided_slice %2 {offsets = [0, 24], sizes = [8, 8], strides = [1, 1]} : vector<8x96xf32> to vector<8x8xf32>
    %68 = vector.extract_strided_slice %2 {offsets = [0, 56], sizes = [8, 8], strides = [1, 1]} : vector<8x96xf32> to vector<8x8xf32>
    %69 = vector.extract_strided_slice %2 {offsets = [0, 88], sizes = [8, 8], strides = [1, 1]} : vector<8x96xf32> to vector<8x8xf32>
    %70 = tpu.transpose %68, [1, 0] : vector<8x8xf32> -> vector<8x8xf32>
    %cst_26 = arith.constant dense<0.000000e+00> : vector<8x8xf32>
    %71 = tpu.matmul %67, %70, %cst_26 {dimension_numbers = #tpu.dot_dimension_numbers<[1], [0], [0], [1], [0, 0, 1, 1], [], []>} : vector<8x8xf32>, vector<8x8xf32>, vector<8x8xf32> -> vector<8x8xf32>
    %cst_27 = arith.constant -3.40282347E+38 : f32
    %72 = vector.broadcast %cst_27 : f32 to vector<8x8xf32>
    %73 = arith.select %5, %71, %72 : vector<8x8xi1>, vector<8x8xf32>
    %cst_28 = arith.constant dense<0xFF800000> : vector<8xf32>
    %74 = vector.multi_reduction <maximumf>, %73, %cst_28 [1] : vector<8x8xf32> to vector<8xf32>
    %75 = vector.shape_cast %74 : vector<8xf32> to vector<8x1xf32>
    %76 = vector.broadcast %75 : vector<8x1xf32> to vector<8x8xf32>
    %77 = arith.subf %73, %76 : vector<8x8xf32>
    %78 = math.exp %77 : vector<8x8xf32>
    %cst_29 = arith.constant dense<0.000000e+00> : vector<8xf32>
    %79 = vector.multi_reduction <add>, %78, %cst_29 [1] : vector<8x8xf32> to vector<8xf32>
    %80 = vector.shape_cast %79 : vector<8xf32> to vector<8x1xf32>
    %81 = vector.broadcast %80 : vector<8x1xf32> to vector<8x8xf32>
    %82 = arith.divf %78, %81 : vector<8x8xf32>
    %cst_30 = arith.constant dense<0.000000e+00> : vector<8x8xf32>
    %83 = tpu.matmul %82, %69, %cst_30 {dimension_numbers = #tpu.dot_dimension_numbers<[1], [0], [0], [1], [0, 0, 1, 1], [], []>} : vector<8x8xf32>, vector<8x8xf32>, vector<8x8xf32> -> vector<8x8xf32>
    %c24 = arith.constant 24 : index
    %c0_31 = arith.constant 0 : index
    %84 = vector.load %arg3[%c24, %c0_31] : memref<32x32xf32, #tpu.memory_space<vmem>>, vector<8x32xf32>
    %cst_32 = arith.constant dense<0.000000e+00> : vector<8x32xf32>
    %85 = tpu.matmul %83, %84, %cst_32 {dimension_numbers = #tpu.dot_dimension_numbers<[1], [0], [0], [1], [0, 0, 1, 1], [], []>} : vector<8x8xf32>, vector<8x32xf32>, vector<8x32xf32> -> vector<8x32xf32>
    %86 = arith.addf %66, %85 : vector<8x32xf32>
    %c0_33 = arith.constant 0 : index
    %c0_34 = arith.constant 0 : index
    %87 = vector.load %arg4[%c0_33, %c0_34] : memref<1x32xf32, #tpu.memory_space<vmem>>, vector<1x32xf32>
    %88 = vector.broadcast %87 : vector<1x32xf32> to vector<8x32xf32>
    %89 = arith.addf %86, %88 : vector<8x32xf32>
    %c0_35 = arith.constant 0 : index
    %c0_36 = arith.constant 0 : index
    %90 = vector.load %arg5[%c0_35, %c0_36] : memref<8x32xf32, #tpu.memory_space<vmem>>, vector<8x32xf32>
    tpu.vector_store %arg5[%c0_35, %c0_36], %89 {strides = array<i32>} : memref<8x32xf32, #tpu.memory_space<vmem>>, vector<8x32xf32>,
    return
  }
  func.func @transform_0(%arg0: i32) -> (i32, i32) {
    %c0_i32 = arith.constant 0 : i32
    %c0_i32_0 = arith.constant 0 : i32
    return %arg0, %c0_i32 : i32, i32
  }
  func.func @transform_1(%arg0: i32) -> (i32, i32) {
    %c0_i32 = arith.constant 0 : i32
    %c0_i32_0 = arith.constant 0 : i32
    %c0_i32_1 = arith.constant 0 : i32
    return %c0_i32, %c0_i32_0 : i32, i32
  }
  func.func @transform_2(%arg0: i32) -> (i32, i32) {
    %c0_i32 = arith.constant 0 : i32
    %c0_i32_0 = arith.constant 0 : i32
    %c0_i32_1 = arith.constant 0 : i32
    return %c0_i32, %c0_i32_0 : i32, i32
  }
  func.func @transform_3(%arg0: i32) -> (i32, i32) {
    %c0_i32 = arith.constant 0 : i32
    %c0_i32_0 = arith.constant 0 : i32
    %c0_i32_1 = arith.constant 0 : i32
    return %c0_i32, %c0_i32_0 : i32, i32
  }
  func.func @transform_4(%arg0: i32) -> (i32, i32) {
    %c0_i32 = arith.constant 0 : i32
    %c0_i32_0 = arith.constant 0 : i32
    return %arg0, %c0_i32 : i32, i32
  }
}

</mosaic_0001>

<bundles_post_ra>
// kernel: multi_head_attention.1
= control target key start
LH: loop header
LB: loop body
LE: loop exit
PB: predicated region body
PF: predicated region fallthrough
CT: control target
= control target key end

     0   :  { %9 = vsyncpa [#allocation3], 0  ;;  %s2174_s0 = inlined_call_operand.hbm [shape: f32[16,32], index: 0, kind: input, shape index: {}]   ;;  %s2175_s1 = inlined_call_operand.hbm [shape: f32[32,96], index: 1, kind: input, shape index: {}]   ;;  %s2176_s2 = inlined_call_operand.hbm [shape: f32[32,32], index: 2, kind: input, shape index: {}]   ;;  %s2177_s3 = inlined_call_operand.vmem [shape: f32[1,32], index: 3, kind: input, shape index: {}]   ;;  %s2178_s4 = inlined_call_operand.hbm [shape: f32[16,32], index: 4, kind: output, shape index: {}]  }
   0x1   :  { %11 = vsyncpa [#allocation3 + $0x1], 0 }
   0x2   :  { %12 = vsyncpa [#allocation6], 0 }
   0x3   :  { %13 = vsyncpa [#allocation4], 0 }
   0x4   :  { %15 = vsyncpa [#allocation4 + $0x1], 0  ;;  %s1842_s15 = smov 0   ;;  %s1844_s16 = smov 0  }
   0x5   :  { %s1846_s17 = smov 0   ;;  %s1848_s18 = smov 0  }
   0x6 LB: > { %s1863_s19 = sadd.s32 4294967295, %s1795_s18   ;;  %s1400_s20 = sadd.s32 4294967294, %s1795_s18   ;;  %s1795_s18 = sphi %s1848_s18, %s2198_s18   ;;  %s1791_s17 = sphi %s1846_s17, %s2197_s17   ;;  %s1787_s16 = sphi %s1844_s16, %s2196_s16   ;;  %s1783_s15 = sphi %s1842_s15, %s2195_s15  }
   0x7   : > { %p41_p0 = scmp.ne.s32.totalorder %s1787_s16, %s1783_s15  ;;  %p2179_p1 = scmp.eq.s32.totalorder %s1863_s19, 0 }
   0x8   : > { %p134_p3 = scmp.eq.s32.totalorder %s1400_s20, 1  ;;  %p1401_p5 = scmp.ge.s32.totalorder %s1795_s18, 1 }
   0x9   : > { %p1872_p4 = por %p2179_p1, %p41_p0  ;;  %p141_p7 = scmp.lt.s32.totalorder %s1795_s18, 3 }
   0xa   : > { %p1877_p6 = por %p134_p3, %p41_p0  ;;  %s1797_s24 = smov [#allocation5]  }
   0xb   : > { %s2182_s21 = scalar_select %p1872_p4, 1, 0 }
   0xc   : > { %s2183_s22 = scalar_select %p1877_p6, 1, 0 }
   0xd   : > { %p1882_p8 = pnand %p1401_p5, %p141_p7  ;;  %s153_s25 = sshll.u32 %s1797_s24, 4  ;;  %s1886_s25 = int_to_ptr.vmem [resolvable:$true] %s153_s25 }
   0xe   : > { %s1798_s27 = smov [#allocation7]   ;;  %s1639_s5 = scalar_lea.hbm %s2175_s1, 512 }
   0xf   : > { %p1552_p9 = pneg %p1882_p8  ;;  %s166_s28 = sshll.u32 %s1798_s27, 4  ;;  %s1897_s28 = int_to_ptr.vmem [resolvable:$true] %s166_s28 }
  0x10   : > { %p1640_p12 = scmp.ne.s32.totalorder %s2175_s1, %s1639_s5  ;;  %p1646_p5 = scmp.lt.u32.totalorder %s1639_s5, %s2175_s1 }
  0x11   : > { %p1893_p11 = pnand %p1552_p9, %p2179_p1 }
  0x13   : > { %p1641_p13 = pneg %p1893_p11 }
  0x15   : > { %p1642_p0 = pnand %p1641_p13, %p1640_p12 }
  0x17   : > { %p1643_p3 = pneg %p1642_p0 }
  0x19   : > { %p1648_p7 = pnand %p1646_p5, %p1643_p3 }
  0x1b   : > { %1651 = shalt.err (!%p1648_p7)
}
  0x1c   : > { %s1652_s10 = scalar_lea.vmem %s1886_s25, 512  ;;  %p1660_p2 = scmp.lt.s32.totalorder %s1886_s25, %s1886_s25 }
  0x1d   : > { %p1653_p9 = scmp.ne.s32.totalorder %s1886_s25, %s1652_s10  ;;  %p1661_p12 = scmp.lt.s32.totalorder %s1652_s10, %s1652_s10 }
  0x1f   : > { %p1655_p10 = pnand %p1653_p9, %p1641_p13  ;;  %p1662_p0 = por %p1661_p12, %p1660_p2 }
  0x21   : > { %p1656_p1 = pneg %p1655_p10 }
  0x23   : > { %p1663_p6 = pnand %p1662_p0, %p1656_p1 }
  0x25   : > { %1666 = shalt.err (!%p1663_p6)
}
  0x26   : > { %s1799_s11 = smov 128   ;;  %s1800_s12 = smov 8  }
  0x27   : > { %1555 = dma.hbm_to_vmem [thread:$0]  (!%p1893_p11), %s2175_s1, 512, %s1886_s25, [#allocation6], %s1799_s11, %s1799_s11, %s1800_s12  }
  0x28   : > { %s1667_s27 = scalar_lea.hbm %s2176_s2, 512 }
  0x29   : > { %p1668_p2 = scmp.ne.s32.totalorder %s2176_s2, %s1667_s27  ;;  %p1674_p10 = scmp.lt.u32.totalorder %s1667_s27, %s2176_s2 }
  0x2b   : > { %p1670_p1 = pnand %p1668_p2, %p1641_p13 }
  0x2d   : > { %p1671_p6 = pneg %p1670_p1 }
  0x2f   : > { %p1676_p3 = pnand %p1674_p10, %p1671_p6 }
  0x31   : > { %1679 = shalt.err (!%p1676_p3)
}
  0x32   : > { %s1680_s25 = scalar_lea.vmem %s1897_s28, 512  ;;  %p1688_p12 = scmp.lt.s32.totalorder %s1897_s28, %s1897_s28 }
  0x33   : > { %p1681_p5 = scmp.ne.s32.totalorder %s1897_s28, %s1680_s25  ;;  %p1689_p0 = scmp.lt.s32.totalorder %s1680_s25, %s1680_s25 }
  0x35   : > { %p1683_p7 = pnand %p1681_p5, %p1641_p13  ;;  %p1690_p2 = por %p1689_p0, %p1688_p12 }
  0x37   : > { %p1684_p9 = pneg %p1683_p7 }
  0x39   : > { %p1691_p1 = pnand %p1690_p2, %p1684_p9 }
  0x3b   : > { %1694 = shalt.err (!%p1691_p1)
}
  0x3c   : > { %1558 = dma.hbm_to_vmem [thread:$0]  (!%p1893_p11), %s2176_s2, 512, %s1897_s28, [#allocation6], %s1799_s11, %s1799_s11, %s1800_s12  }
  0x3d   : > { %s1952_s9 = sadd.s32 1, %s1795_s18   ;;  %s28_s26 = sadd.s32 1, %s1791_s17 }
  0x3e   : > { %s25_s10 = ssub.s32 %s1795_s18, %s1952_s9  ;;  %p35_p13 = scmp.ne.s32.totalorder %s1791_s17, %s1787_s16 }
  0x3f   : > { %p26_p6 = scmp.eq.s32.totalorder %s25_s10, 0  ;;  %p36_p10 = scmp.eq.s32.totalorder %s1795_s18, 0 }
  0x40   : > { %p2186_p3 = scmp.eq.s32.totalorder %s1863_s19, 1  ;;  %p1569_p7 = scmp.lt.s32.totalorder %s1795_s18, 2 }
  0x41   : > { %s1968_s14 = scalar_select %p26_p6, %s1791_s17, %s28_s26  }
  0x42   : > { %p1962_p5 = por %p2186_p3, %p35_p13  ;;  %p37_p9 = por %p36_p10, %p35_p13 }
  0x43   : > { %s183_s20 = sand.u32 1, %s1791_s17   ;;  %s1406_s28 = sshll.u32 %s1795_s18, 7 }
  0x44   : > { %s2187_s13 = scalar_select %p1962_p5, 1, 0 }
  0x45   : > { %s1405_s24 = sshll.u32 %s183_s20, 3  ;;  %s1975_s27 = scalar_lea.hbm %s2174_s0, %s1406_s28 }
  0x46   : > { %s187_s29 = scalar_lea.vmem [#allocation2], %s1405_s24  ;;  %p1979_p11 = pnand %p1569_p7, %p37_p9 }
  0x47   : > { %s194_s30 = sshll.u32 %s187_s29, 4  ;;  %s184_s6 = scalar_lea.sflag [#allocation3], %s183_s20  ;;  %s1977_s30 = int_to_ptr.vmem [resolvable:$true] %s194_s30 }
  0x48   : > { %s1695_s25 = scalar_lea.hbm %s1975_s27, 128  ;;  %p1697_p0 = pneg %p1979_p11 }
  0x49   : > { %p1696_p12 = scmp.ne.s32.totalorder %s1975_s27, %s1695_s25  ;;  %s1700_s26 = scalar_lea.hbm %s2174_s0, 256 }
  0x4a   : > { %p1701_p13 = scmp.lt.u32.totalorder %s1975_s27, %s2174_s0  ;;  %p1702_p6 = scmp.lt.u32.totalorder %s1700_s26, %s1695_s25 }
  0x4b   : > { %p1698_p2 = pnand %p1697_p0, %p1696_p12  ;;  %p1704_p3 = scmp.lt.u32.totalorder %s1695_s25, %s1975_s27 }
  0x4c   : > { %p1703_p10 = por %p1702_p6, %p1701_p13 }
  0x4d   : > { %p1699_p1 = pneg %p1698_p2 }
  0x4e   : > { %p1705_p7 = por %p1704_p3, %p1703_p10 }
  0x50   : > { %p1706_p9 = pnand %p1705_p7, %p1699_p1 }
  0x52   : > { %1709 = shalt.err (!%p1706_p9)
}
  0x53   : > { %s1710_s20 = scalar_lea.vmem %s1977_s30, 128  ;;  %s1801_s28 = smov [#allocation2]  }
  0x54   : > { %p1711_p12 = scmp.ne.s32.totalorder %s1977_s30, %s1710_s20  ;;  %s1715_s11 = sshll.u32 %s1801_s28, 4  ;;  %s1716_s11 = int_to_ptr.vmem [resolvable:$false] %s1715_s11 }
  0x55   : > { %s1717_s12 = scalar_lea.vmem %s1716_s11, 256  ;;  %p1718_p4 = scmp.lt.s32.totalorder %s1977_s30, %s1716_s11 }
  0x56   : > { %p1713_p2 = pnand %p1711_p12, %p1697_p0  ;;  %p1719_p13 = scmp.lt.s32.totalorder %s1717_s12, %s1710_s20 }
  0x58   : > { %p1714_p5 = pneg %p1713_p2  ;;  %p1720_p6 = por %p1719_p13, %p1718_p4 }
  0x5a   : > { %p1721_p10 = pnand %p1720_p6, %p1714_p5 }
  0x5c   : > { %1724 = shalt.err (!%p1721_p10)
}
  0x5d   : > { %1562 = dma.hbm_to_vmem [thread:$0]  (!%p1979_p11), %s1975_s27, 128, %s1977_s30, %s184_s6  }
  0x5e   : > { %203 = sbr.rel (%p1882_p8) target bundleno = 2692 (0xa84), region = 36  ;;  %s2011_s29 = sand.u32 (!%p1882_p8), 1, %s1787_s16  }
  0x5f   : > { %s1408_s25 = sshll.u32 (!%p1882_p8), %s2011_s29, 3  ;;  %s206_s7 = scalar_lea.sflag (!%p1882_p8), [#allocation3], %s2011_s29 }
  0x60   : > { %s209_s8 = scalar_lea.vmem (!%p1882_p8), [#allocation2], %s1408_s25  ;;  %p2189_p4 = scmp.ne.s32.totalorder (!%p1882_p8), %s2182_s21, 0 }
  0x65   : > { %1770 = dma.done.wait (%p2189_p4), %s206_s7, 128  }
  0x66   : > { %1772 = vsyncadd (%p2189_p4), %s206_s7, 4294967168  ;;  %p2190_p5 = scmp.eq.s32.totalorder %s1863_s19, 0 }
  0x68   : > { %1774 = dma.done.wait (%p2190_p5), [#allocation6], 1024   ;;  %p2191_p8 = pmov %p2190_p5 }
  0x69   : > { %v1802_v0 = vmov 0.0|0.0   ;;  %vm1803_vm0 = vmmov 0   ;;  %v1804_v1 = vmov 0.0   ;;  %v243_v2 = vld [vmem:[#allocation5] sm:$0xff]  ;;  %v244_v3 = vld [vmem:[#allocation5 + $0x8] sm:$0xff]  ;;  %v245_v4 = vld [vmem:[#allocation5 + $0x10] sm:$0xff]  ;;  %v321_v14 = vlaneseq }
  0x6a   : > { %1776 = vsyncadd (%p2191_p8), [#allocation6], 4294966272  ;;  %1534 = vmatprep.subr.bf16.mxu0 %v1802_v0  ;;  %1471 = vmatprep.mubr.msk.f32.mxu0 %vm1803_vm0, %v1804_v1  ;;  %v1535_v5 = vpack.c.bf16 %v244_v3, %v243_v2  ;;  %v246_v6 = vld [vmem:[#allocation5 + $0x18] sm:$0xff]  ;;  %vm247_vm1 = vcmask 261120   ;;  %s1805_s21 = smov 120   ;;  %s1806_s23 = smov 96  }
  0x6b   : > { %1474 = vmatprep.subr.mxu1 %v1804_v1  ;;  %1476 = vmatprep.mubr.msk.f32.mxu1 %vm1803_vm0, %v1804_v1  ;;  %v1538_v7 = vpack.c.bf16 %v246_v6, %v245_v4  ;;  %v242_v8 = vld [vmem:[%s209_s8] sm:$0xff]  ;;  %s1807_s27 = smov 88   ;;  %vm329_vm2 = vcmask 64512   ;;  %v2050_v15 = vshrl.u32 %v321_v14, 7  ;;  %v2052_v16 = vand.u32 127, %v321_v14  ;;  %s1808_s30 = smov 56  }
  0x6c   : > { %1536 = vmatpush3.bf16.msra.mxu0 %v1535_v5  ;;  %s1809_s5 = smov 64   ;;  %s1810_s6 = smov 80   ;;  %v659_v35 = vld [vmem:[#allocation7 + $0x8] sm:$0xff]  ;;  %v492_v44 = vld [vmem:[#allocation7] sm:$0xff] }
  0x6d   : > { %1537 = vmatprep.subr.bf16.mxu0 %v1802_v0  ;;  %vm325_vm3 = vcmp.le.s32.totalorder %v2052_v16, %v2050_v15  ;;  %s1811_s26 = smov 112   ;;  %s1812_s10 = smov 72   ;;  %v1213_v15 = vld [vmem:[#allocation7 + $0x18] sm:$0xff] }
  0x6e   : > { %s1813_s24 = smov 104   ;;  %s1814_s20 = smov 48  }
  0x6f   : > { %s1815_s28 = smov 40   ;;  %s1431_s7 = sshll.u32 %s1863_s19, 7 }
  0x70   : > { %1539 = vmatpush3.bf16.msra.mxu0 %v1538_v7  ;;  %s241_s8 = scalar_lea.vmem [#allocation8], %s1408_s25  ;;  %p2192_p0 = scmp.ne.s32.totalorder %s2187_s13, 0 }
  0x71   : > { %1484 = vmatprep.subr.mxu0 %v1804_v1  ;;  %s1816_s25 = smov [#allocation8]  }
  0x73   : > { %1472 = vmatmul.mubr.msk.f32.vlgmr.msra.gmra.mrb[0].mxu0 %vm247_vm1, %v242_v8  ;;  %v972_v8 = vld [vmem:[#allocation7 + $0x10] sm:$0xff] }
  0x74   : > { %1486 = vmatprep.mubr.msk.f32.mxu0 %vm1803_vm0, %v1804_v1 }
 0x146   : > { %v2034_v9 = vpop.f32.mrb[0].mxu0 }
 0x147   : > { %493 = vrot.lane.b32.xlu1 %v2034_v9, %s1805_s21  ;;  %327 = vrot.lane.b32.xlu0 %v2034_v9, %s1806_s23  ;;  %v1473_v10 = vpop.f32.mrb[1].mxu0  ;;  %s1311_s21 = sshll.u32 %s241_s8, 4  ;;  %s2131_s21 = int_to_ptr.vmem [resolvable:$true] %s1311_s21 }
 0x148   : > { %s1725_s19 = scalar_lea.vmem %s2131_s21, 128 }
 0x149   : > { %p1726_p11 = scmp.ne.s32.totalorder %s2131_s21, %s1725_s19 }
 0x14b   : > { %495 = vrot.lane.b32.xlu0 %v2034_v9, %s1807_s27  ;;  %p1727_p1 = pnand %p1726_p11, %p2192_p0 }
 0x14d   : > { %p1728_p3 = pneg %p1727_p1 }
 0x1b9   : > { %v328_v11 = vpop.permute.xlu0 %327  ;;  %v494_v13 = vpop.permute.xlu1 %493 }
 0x1ba   : > { %1475 = vmatpush3.xpose.msk.msra.mxu1 %vm329_vm2, %v328_v11 }
 0x1bb   : > { %1479 = vmatprep.subr.mxu1 %v1804_v1 }
 0x1bd   : > { %1477 = vmatmul.mubr.msk.f32.vlgmr.msra.gmra.mrb[0].mxu1 %vm329_vm2, %v2034_v9  ;;  %v496_v12 = vpop.permute.xlu0 %495 }
 0x1be   : > { %1485 = vmatpush3.xpose.msk.msra.mxu0 %vm329_vm2, %v496_v12  ;;  %1481 = vmatprep.mubr.msk.f32.mxu1 %vm1803_vm0, %v1804_v1 }
 0x1bf   : > { %1494 = vmatprep.subr.mxu0 %v1804_v1 }
 0x1c1   : > { %1487 = vmatmul.mubr.msk.f32.vlgmr.msra.gmra.mrb[2].mxu0 %vm329_vm2, %v494_v13 }
 0x1c2   : > { %1496 = vmatprep.mubr.msk.f32.mxu0 %vm1803_vm0, %v1804_v1  ;;  %1495 = vmatpush3.msra.mxu0 %v659_v35 }
 0x1c3   : > { %1504 = vmatprep.subr.mxu0 %v1804_v1 }
 0x290   : > { %v400_v17 = vpop.f32.mrb[0].mxu1 }
 0x291   : > { %v404_v18 = vsel %vm325_vm3, %v400_v17, -3.4028235e+38  ;;  %v1478_v19 = vpop.f32.mrb[1].mxu1 }
 0x292   : > { %v405_v20 = vsel %vm329_vm2, %v404_v18, -inf }
 0x293   : > { %406 = vmax.xlane.f32.xlu1 %v405_v20 }
 0x294   : > { %v567_v21 = vpop.f32.mrb[2].mxu0 }
 0x295   : > { %v571_v22 = vsel %vm325_vm3, %v567_v21, -3.4028235e+38  ;;  %v1488_v23 = vpop.f32.mrb[3].mxu0 }
 0x296   : > { %v572_v24 = vsel %vm329_vm2, %v571_v22, -inf }
 0x297   : > { %573 = vmax.xlane.f32.xlu0 %v572_v24 }
 0x320   : > { %v407_v25 = vpop.xlane.xlu1 %406 }
 0x321   : > { %v408_v26 = vsub.f32 %v404_v18, %v407_v25 }
 0x323   : > { %v409_v27 = vmul.f32 1.442695, %v408_v26 }
 0x324   : > { %v574_v28 = vpop.xlane.xlu0 %573 }
 0x325   : > { %1623 = vpow2.f32 %v409_v27  ;;  %v575_v29 = vsub.f32 %v571_v22, %v574_v28 }
 0x327   : > { %v576_v30 = vmul.f32 1.442695, %v575_v29 }
 0x329   : > { %1625 = vpow2.f32 %v576_v30  ;;  %v1429_v30 = vld [vmem:[%s2177_s3] ss:$0 sm:$0xff] }
 0x32f   : > { %v1624_v31 = vpop.eup %1623 }
 0x330   : > { %v411_v32 = vsel %vm329_vm2, %v1624_v31, 0.0 }
 0x331   : > { %412 = vadd.xlane.f32.xlu0 %v411_v32 }
 0x333   : > { %v1626_v33 = vpop.eup %1625 }
 0x334   : > { %v578_v34 = vsel %vm329_vm2, %v1626_v33, 0.0 }
 0x335   : > { %579 = vadd.xlane.f32.xlu1 %v578_v34 }
 0x346   : > { %583 = vrot.lane.b32.xlu1 %v2034_v9, %s1808_s30  ;;  %s2129_s30 = scalar_lea.hbm %s2178_s4, %s1431_s7 }
 0x347   : > { %416 = vrot.lane.b32.xlu0 %v2034_v9, %s1809_s5  ;;  %s1298_s5 = scalar_lea.sflag [#allocation4], %s2011_s29 }
 0x34a   : > { %808 = vrot.lane.b32.xlu1 %v2034_v9, %s1810_s6  ;;  %s1729_s6 = sshll.u32 %s1816_s25, 4  ;;  %s1730_s6 = int_to_ptr.vmem [resolvable:$false] %s1729_s6 }
 0x34b   : > { %806 = vrot.lane.b32.xlu0 %v2034_v9, %s1811_s26  ;;  %s1731_s26 = scalar_lea.vmem %s1730_s6, 256  ;;  %p1732_p7 = scmp.lt.s32.totalorder %s2131_s21, %s1730_s6 }
 0x34c   : > { %p1733_p9 = scmp.lt.s32.totalorder %s1731_s26, %s1725_s19 }
 0x34e   : > { %p1734_p12 = por %p1733_p9, %p1732_p7 }
 0x350   : > { %p1735_p2 = pnand %p1734_p12, %p1728_p3 }
 0x3be   : > { %v413_v36 = vpop.xlane.xlu0 %412 }
 0x3bf   : > { %1627 = vrcp.f32 %v413_v36 }
 0x3c2   : > { %v580_v37 = vpop.xlane.xlu1 %579  ;;  %v417_v38 = vpop.permute.xlu0 %416 }
 0x3c3   : > { %1629 = vrcp.f32 %v580_v37  ;;  %1480 = vmatpush3.msra.mxu1 %v417_v38 }
 0x3c4   : > { %1489 = vmatprep.subr.mxu1 %v1804_v1 }
 0x3c6   : > { %v584_v41 = vpop.permute.xlu1 %583  ;;  %v807_v50 = vpop.permute.xlu0 %806 }
 0x3c9   : > { %v1628_v39 = vpop.eup %1627 }
 0x3ca   : > { %v415_v40 = vmul.f32 %v1628_v39, %v1624_v31  ;;  %v809_v48 = vpop.permute.xlu1 %808 }
 0x3cc   : > { %1482 = vmatmul.mubr.msk.f32.vlgmr.msra.gmra.mrb[2].mxu1 %vm329_vm2, %v415_v40 }
 0x3cd   : > { %v1630_v42 = vpop.eup %1629  ;;  %1490 = vmatpush3.msra.mxu1 %v584_v41  ;;  %1491 = vmatprep.mubr.msk.f32.mxu1 %vm1803_vm0, %v1804_v1 }
 0x3ce   : > { %v582_v43 = vmul.f32 %v1630_v42, %v1626_v33  ;;  %1499 = vmatprep.subr.mxu1 %v1804_v1 }
 0x3d0   : > { %1492 = vmatmul.mubr.msk.f32.vlgmr.msra.gmra.mrb[4].mxu1 %vm329_vm2, %v582_v43 }
 0x3d1   : > { %1501 = vmatprep.mubr.msk.f32.mxu1 %vm1803_vm0, %v1804_v1  ;;  %1500 = vmatpush3.msra.mxu1 %v492_v44 }
 0x3d2   : > { %1509 = vmatprep.subr.mxu1 %v1804_v1 }
 0x49f   : > { %v488_v45 = vpop.f32.mrb[2].mxu1 }
 0x4a0   : > { %v1483_v46 = vpop.f32.mrb[3].mxu1  ;;  %1502 = vmatmul.mubr.msk.f32.vlgmr.msra.gmra.mrb[6].mxu1 %vm329_vm2, %v488_v45 }
 0x4a1   : > { %1511 = vmatprep.mubr.msk.f32.mxu1 %vm1803_vm0, %v1804_v1 }
 0x4a3   : > { %v655_v47 = vpop.f32.mrb[4].mxu1 }
 0x4a4   : > { %v1493_v49 = vpop.f32.mrb[5].mxu1  ;;  %1497 = vmatmul.mubr.msk.f32.vlgmr.msra.gmra.mrb[4].mxu0 %vm329_vm2, %v655_v47 }
 0x4a5   : > { %1505 = vmatpush3.xpose.msk.msra.mxu0 %vm329_vm2, %v809_v48  ;;  %1506 = vmatprep.mubr.msk.f32.mxu0 %vm1803_vm0, %v1804_v1 }
 0x4a6   : > { %1514 = vmatprep.subr.mxu0 %v1804_v1 }
 0x4a8   : > { %1507 = vmatmul.mubr.msk.f32.vlgmr.msra.gmra.mrb[6].mxu0 %vm329_vm2, %v807_v50 }
 0x4a9   : > { %1516 = vmatprep.mubr.msk.f32.mxu0 %vm1803_vm0, %v1804_v1  ;;  %1515 = vmatpush3.msra.mxu0 %v972_v8 }
 0x4aa   : > { %1524 = vmatprep.subr.mxu0 %v1804_v1 }
 0x573   : > { %v802_v51 = vpop.f32.mrb[6].mxu1 }
 0x574   : > { %v1503_v52 = vpop.f32.mrb[7].mxu1 }
 0x577   : > { %v729_v53 = vpop.f32.mrb[4].mxu0 }
 0x578   : > { %v803_v54 = vadd.f32 %v802_v51, %v729_v53  ;;  %v1498_v55 = vpop.f32.mrb[5].mxu0 }
 0x57b   : > { %v880_v56 = vpop.f32.mrb[6].mxu0 }
 0x57c   : > { %v884_v57 = vsel %vm325_vm3, %v880_v56, -3.4028235e+38  ;;  %v1508_v58 = vpop.f32.mrb[7].mxu0 }
 0x57d   : > { %v885_v59 = vsel %vm329_vm2, %v884_v57, -inf }
 0x57e   : > { %886 = vmax.xlane.f32.xlu1 %v885_v59 }
 0x58f   : > { %1049 = vrot.lane.b32.xlu1 %v2034_v9, %s1812_s10 }
 0x593   : > { %1047 = vrot.lane.b32.xlu1 %v2034_v9, %s1813_s24 }
 0x60b   : > { %v887_v60 = vpop.xlane.xlu1 %886 }
 0x60c   : > { %v888_v61 = vsub.f32 %v884_v57, %v887_v60 }
 0x60e   : > { %v889_v62 = vmul.f32 1.442695, %v888_v61 }
 0x60f   : > { %v1050_v5 = vpop.permute.xlu1 %1049 }
 0x610   : > { %1631 = vpow2.f32 %v889_v62 }
 0x613   : > { %v1048_v7 = vpop.permute.xlu1 %1047 }
 0x61a   : > { %v1632_v63 = vpop.eup %1631 }
 0x61b   : > { %v891_v0 = vsel %vm329_vm2, %v1632_v63, 0.0 }
 0x61c   : > { %892 = vadd.xlane.f32.xlu0 %v891_v0 }
 0x632   : > { %896 = vrot.lane.b32.xlu0 %v2034_v9, %s1814_s20 }
 0x6a9   : > { %v893_v2 = vpop.xlane.xlu0 %892 }
 0x6aa   : > { %1633 = vrcp.f32 %v893_v2 }
 0x6ad   : > { %v897_v3 = vpop.permute.xlu0 %896 }
 0x6ae   : > { %1510 = vmatpush3.msra.mxu1 %v897_v3 }
 0x6af   : > { %1519 = vmatprep.subr.mxu1 %v1804_v1 }
 0x6b4   : > { %v1634_v4 = vpop.eup %1633 }
 0x6b5   : > { %v895_v6 = vmul.f32 %v1634_v4, %v1632_v63 }
 0x6b7   : > { %1512 = vmatmul.mubr.msk.f32.vlgmr.msra.gmra.mrb[8].mxu1 %vm329_vm2, %v895_v6 }
 0x6b8   : > { %1520 = vmatpush3.xpose.msk.msra.mxu1 %vm329_vm2, %v1050_v5  ;;  %1521 = vmatprep.mubr.msk.f32.mxu1 %vm1803_vm0, %v1804_v1 }
 0x6b9   : > { %1529 = vmatprep.subr.mxu1 %v1804_v1 }
 0x6bb   : > { %1522 = vmatmul.mubr.msk.f32.vlgmr.msra.gmra.mrb[10].mxu1 %vm329_vm2, %v1048_v7 }
 0x6bc   : > { %1531 = vmatprep.mubr.msk.f32.mxu1 %vm1803_vm0, %v1804_v1  ;;  %1530 = vmatpush3.msra.mxu1 %v1213_v15 }
 0x78a   : > { %v968_v10 = vpop.f32.mrb[8].mxu1 }
 0x78b   : > { %v1513_v11 = vpop.f32.mrb[9].mxu1  ;;  %1517 = vmatmul.mubr.msk.f32.vlgmr.msra.gmra.mrb[8].mxu0 %vm329_vm2, %v968_v10 }
 0x78c   : > { %1526 = vmatprep.mubr.msk.f32.mxu0 %vm1803_vm0, %v1804_v1 }
 0x78e   : > { %v1121_v12 = vpop.f32.mrb[10].mxu1 }
 0x78f   : > { %v1125_v13 = vsel %vm325_vm3, %v1121_v12, -3.4028235e+38  ;;  %v1523_v14 = vpop.f32.mrb[11].mxu1 }
 0x790   : > { %v1126_v17 = vsel %vm329_vm2, %v1125_v13, -inf }
 0x791   : > { %1127 = vmax.xlane.f32.xlu0 %v1126_v17 }
 0x7a7   : > { %1137 = vrot.lane.b32.xlu0 %v2034_v9, %s1815_s28 }
 0x81e   : > { %v1128_v18 = vpop.xlane.xlu0 %1127 }
 0x81f   : > { %v1129_v19 = vsub.f32 %v1125_v13, %v1128_v18 }
 0x821   : > { %v1130_v20 = vmul.f32 1.442695, %v1129_v19 }
 0x822   : > { %v1138_v21 = vpop.permute.xlu0 %1137 }
 0x823   : > { %1635 = vpow2.f32 %v1130_v20  ;;  %1525 = vmatpush3.msra.mxu0 %v1138_v21 }
 0x82d   : > { %v1636_v22 = vpop.eup %1635 }
 0x82e   : > { %v1132_v1 = vsel %vm329_vm2, %v1636_v22, 0.0 }
 0x82f   : > { %1133 = vadd.xlane.f32.xlu1 %v1132_v1 }
 0x85e   : > { %v1042_v16 = vpop.f32.mrb[8].mxu0 }
 0x85f   : > { %v1046_v23 = vadd.f32 %v1042_v16, %v803_v54  ;;  %v1518_v24 = vpop.f32.mrb[9].mxu0 }
 0x8bc   : > { %v1134_v25 = vpop.xlane.xlu1 %1133 }
 0x8bd   : > { %1637 = vrcp.f32 %v1134_v25 }
 0x8c7   : > { %v1638_v9 = vpop.eup %1637 }
 0x8c8   : > { %v1136_v26 = vmul.f32 %v1638_v9, %v1636_v22 }
 0x8ca   : > { %1527 = vmatmul.mubr.msk.f32.vlgmr.msra.gmra.mrb[10].mxu0 %vm329_vm2, %v1136_v26 }
 0x99d   : > { %v1209_v27 = vpop.f32.mrb[10].mxu0 }
 0x99e   : > { %v1528_v28 = vpop.f32.mrb[11].mxu0  ;;  %1532 = vmatmul.mubr.msk.f32.vlgmr.msra.gmra.mrb[12].mxu1 %vm329_vm2, %v1209_v27 }
 0xa71   : > { %v1283_v29 = vpop.f32.mrb[12].mxu1 }
 0xa72   : > { %v1287_v31 = vadd.f32 %v1283_v29, %v1046_v23  ;;  %v1533_v32 = vpop.f32.mrb[13].mxu1 }
 0xa74   : > { %v1295_v33 = vadd.f32 %v1429_v30, %v1287_v31 }
 0xa76   : > { %1296 = vst.msk [vmem:[%s241_s8] sm:$0xff] %vm247_vm1, %v1295_v33 }
 0xa77   : > { %1738 = shalt.err (!%p1735_p2)
}
 0xa78   : > { %s1739_s29 = scalar_lea.hbm %s2129_s30, 128  ;;  %s1743_s20 = scalar_lea.hbm %s2178_s4, 256 }
 0xa79   : > { %p1740_p13 = scmp.ne.s32.totalorder %s2129_s30, %s1739_s29  ;;  %p1744_p4 = scmp.lt.u32.totalorder %s2129_s30, %s2178_s4 }
 0xa7a   : > { %p1745_p5 = scmp.lt.u32.totalorder %s1743_s20, %s1739_s29  ;;  %p1747_p11 = scmp.lt.u32.totalorder %s1739_s29, %s2129_s30 }
 0xa7b   : > { %p1741_p6 = pnand %p1740_p13, %p2192_p0 }
 0xa7c   : > { %p1746_p8 = por %p1745_p5, %p1744_p4 }
 0xa7d   : > { %p1742_p10 = pneg %p1741_p6 }
 0xa7e   : > { %p1748_p1 = por %p1747_p11, %p1746_p8 }
 0xa80   : > { %p1749_p3 = pnand %p1748_p1, %p1742_p10 }
 0xa82   : > { %1752 = shalt.err (!%p1749_p3)
}
 0xa83   : > { %1550 = dma.vmem_to_hbm [thread:$0]  (%p2192_p0), %s2131_s21, 128, %s2129_s30, %s1298_s5  }
 0xa84 PF: > { %s1323_s12 = sand.u32 1, %s1783_s15   ;;  %p2193_p7 = scmp.ne.s32.totalorder %s2183_s22, 0 }
 0xa85   : > { %p2194_p9 = scmp.ge.s32.totalorder %s1795_s18, 2  ;;  %s1324_s7 = scalar_lea.sflag [#allocation4], %s1323_s12 }
 0xa87   : > { %p1564_p12 = pnand %p2194_p9, %p2193_p7 }
 0xa89   : > { %1778 = dma.done.wait (!%p1564_p12), %s1324_s7, 128  }
 0xa8a   : > { %1780 = vsyncadd (!%p1564_p12), %s1324_s7, 4294967168  ;;  %p18_p2 = scmp.ge.s32.totalorder %s1952_s9, 4   ;;  %s2195_s15 = smov %s1787_s16 }
 0xa8b   : > { %s2196_s16 = smov %s1791_s17  ;;  %s2197_s17 = smov %s1968_s14 }
 0xa8c   : > { %s2198_s18 = smov %s1952_s9  ;;  %20 = sbr.rel (!%p18_p2) target bundleno = 6 (0x6), region = 89 }
 0xa93   :  { %1329 = vsyncpa [#allocation3], 1 }
 0xa94   :  { %1331 = vsyncpa [#allocation3 + $0x1], 1 }
 0xa95   :  { %1332 = vsyncpa [#allocation6], 1 }
 0xa96   :  { %1333 = vsyncpa [#allocation4], 1 }
 0xa97   :  { %1335 = vsyncpa [#allocation4 + $0x1], 1 }

</bundles_post_ra>
